<compile_context>
chip_gen: v6e
topology: v6e:2x2x1
jax: 0.10.0
libtpu: 0.0.40
codegen_flags: <defaults>
</compile_context>

<pallas_src>
import functools

import jax
import jax.numpy as jnp
from jax.experimental import pallas as pl
from jax.experimental.pallas import tpu as pltpu

LANE = 128
BATCH_ALIGN = 32          # multiple of 8/16/32 -> legal tiling for f32/bf16/int8


def _round_up(x, m):
    return (x + m - 1) // m * m


def _gatel0rd_kernel(x_ref, h0_ref, wx_ref, wh1_ref, wh2_ref, b1_ref,
                     y_ref, theta_ref, hfin_ref, h_scr, *, lp, op):
    """One (batch_tile, t) grid step of the fused sequence.

    x_ref    : (Bt, in)         bf16  inputs for timestep t
    h0_ref   : (Bt, lp)         f32   initial hidden state (consumed at t==0)
    wx_ref   : (in, 2lp+2op)    bf16  x-side weights  [Wgx|Wrx|Wpx|Wox]
    wh1_ref  : (lp, 2lp)        bf16  h-side weights  [Wgh|Wrh]
    wh2_ref  : (lp, 2op)        bf16  h_t-side weights [Wph|Woh]
    b1_ref   : (1, 2lp+2op)     f32   fused biases    [bg|br|bp|bo]
    y_ref    : (Bt, op)         f32   per-step output y_t
    theta_ref: (Bt, lp)         bf16  per-step gate indicator (exact 0/1)
    hfin_ref : (Bt, lp)         f32   final hidden state (written at last t)
    h_scr    : (Bt, lp)         f32   hidden-state carry across the time axis
    """
    t = pl.program_id(1)

    @pl.when(t == 0)
    def _():
        h_scr[...] = h0_ref[...]

    h_prev = h_scr[...]                         # f32 carry
    x = x_ref[...]                              # bf16

    # Stage 1: one wide MXU pass for the x-side of all four projections
    # (+ fused biases) and one for the h-side of the g/r projections.
    pre = jnp.dot(x, wx_ref[...], preferred_element_type=jnp.float32) + b1_ref[...]
    gr_h = jnp.dot(h_prev.astype(jnp.bfloat16), wh1_ref[...],
                   preferred_element_type=jnp.float32)

    g_pre = pre[:, :lp] + gr_h[:, :lp]
    r_pre = pre[:, lp:2 * lp] + gr_h[:, lp:]
    po_x = pre[:, 2 * lp:]                      # (Bt, 2*op): x-side of p/o + biases

    # Elementwise / transcendental math in f32 (v5e has no bf16 VPU/EUP path).
    lam = jnp.maximum(jnp.tanh(g_pre), 0.0)     # ReTanh forward
    theta = lam > 0.0                           # HeavisideST forward
    h_hat = jnp.tanh(r_pre)
    h_t = lam * h_hat + (1.0 - lam) * h_prev

    # Stage 2: h_t-side of the p/o projections fused into one MXU pass.
    po = jnp.dot(h_t.astype(jnp.bfloat16), wh2_ref[...],
                 preferred_element_type=jnp.float32) + po_x
    y = jnp.tanh(po[:, :op]) * jax.nn.sigmoid(po[:, op:])

    h_scr[...] = h_t
    y_ref[...] = y
    theta_ref[...] = theta.astype(jnp.bfloat16)   # exact 0/1, half the writeback

    @pl.when(t == pl.num_programs(1) - 1)
    def _():
        hfin_ref[...] = h_t


def pack_params(p):
    """Fuse/pad the split PyTorch-style params into the kernel layout."""
    in_dim = p["wgx"].shape[0]
    lat = p["wgh"].shape[0]
    out = p["bp"].shape[1]
    lp = _round_up(lat, LANE)
    op = _round_up(out, LANE)

    def pad_cols(w, n):
        return jnp.pad(w, ((0, 0), (0, n - w.shape[1])))

    def pad_rows(w, n):
        return jnp.pad(w, ((0, n - w.shape[0]), (0, 0)))

    wx = jnp.concatenate([
        pad_cols(p["wgx"], lp), pad_cols(p["wrx"], lp),
        pad_cols(p["wpx"], op), pad_cols(p["wox"], op),
    ], axis=1).astype(jnp.bfloat16)

    wh1 = jnp.concatenate([
        pad_rows(pad_cols(p["wgh"], lp), lp),
        pad_rows(pad_cols(p["wrh"], lp), lp),
    ], axis=1).astype(jnp.bfloat16)

    wh2 = jnp.concatenate([
        pad_rows(pad_cols(p["wph"], op), lp),
        pad_rows(pad_cols(p["woh"], op), lp),
    ], axis=1).astype(jnp.bfloat16)

    b1 = jnp.concatenate([
        pad_cols(p["bg"], lp), pad_cols(p["br"], lp),
        pad_cols(p["bp"], op), pad_cols(p["bo"], op),
    ], axis=1).astype(jnp.float32)

    return {"wx": wx, "wh1": wh1, "wh2": wh2, "b1": b1,
            "dims": (in_dim, lat, out, lp, op)}


def gatel0rd_sequence(x_seq, h0, packed, *, batch_tile=None):
    """Apply the GateL0RD cell over a (T, B, in) sequence in ONE pallas_call.

    Returns (y_seq (T,B,out), h_final (B,lat), theta_seq (T,B,lat)).
    """
    in_dim, lat, out, lp, op = packed["dims"]
    T, B, in_d = x_seq.shape
    assert in_d == in_dim
    if h0 is None:
        h0 = jnp.zeros((B, lat), jnp.float32)
    assert h0.shape == (B, lat)

    b_min = _round_up(max(B, BATCH_ALIGN), BATCH_ALIGN)
    if batch_tile is None:
        if b_min <= 256:
            batch_tile = b_min                  # whole (padded) batch in one tile
        else:
            # >=2 parallel grid steps so v7x's two TensorCores both get work;
            # 512-row tiles keep per-grid-step overhead well amortized.
            batch_tile = min(_round_up((b_min + 1) // 2, BATCH_ALIGN), 512)
    assert batch_tile % BATCH_ALIGN == 0
    b_pad = _round_up(b_min, batch_tile)
    nb = b_pad // batch_tile

    # x: batch-pad + single bf16 cast (halves the per-step activation DMA).
    x_p = jnp.pad(x_seq.astype(jnp.bfloat16), ((0, 0), (0, b_pad - B), (0, 0)))
    # h0: zero-pad to lane-dense lp (padded lanes stay zero through recursion).
    h0_p = jnp.pad(h0.astype(jnp.float32), ((0, b_pad - B), (0, lp - lat)))

    kernel = functools.partial(_gatel0rd_kernel, lp=lp, op=op)

    def resident(shape):
        # constant index_map -> fetched once, stays resident in VMEM
        return pl.BlockSpec(shape, lambda b, t: (0,) * len(shape))

    y, theta, h_fin = pl.pallas_call(
        kernel,
        out_shape=[
            jax.ShapeDtypeStruct((T, b_pad, op), jnp.float32),
            jax.ShapeDtypeStruct((T, b_pad, lp), jnp.bfloat16),
            jax.ShapeDtypeStruct((b_pad, lp), jnp.float32),
        ],
        grid_spec=pltpu.PrefetchScalarGridSpec(
            num_scalar_prefetch=0,
            grid=(nb, T),                       # batch tiles (parallel) x time (arbitrary)
            in_specs=[
                pl.BlockSpec((None, batch_tile, in_dim), lambda b, t: (t, b, 0)),
                pl.BlockSpec((batch_tile, lp), lambda b, t: (b, 0)),
                resident(packed["wx"].shape),
                resident(packed["wh1"].shape),
                resident(packed["wh2"].shape),
                resident(packed["b1"].shape),
            ],
            out_specs=[
                pl.BlockSpec((None, batch_tile, op), lambda b, t: (t, b, 0)),
                pl.BlockSpec((None, batch_tile, lp), lambda b, t: (t, b, 0)),
                pl.BlockSpec((batch_tile, lp), lambda b, t: (b, 0)),
            ],
            scratch_shapes=[pltpu.VMEM((batch_tile, lp), jnp.float32)],
        ),
        compiler_params=pltpu.CompilerParams(
            dimension_semantics=("parallel", "arbitrary"),
            # Working set is only a few MiB even at batch_tile=512; 32 MiB
            # scoped limit is fine on v5e/v6e/v7x — never shrink tiles for VMEM.
            vmem_limit_bytes=32 * 1024 * 1024,
        ),
    )(x_p, h0_p, packed["wx"], packed["wh1"], packed["wh2"], packed["b1"])

    return (y[:, :B, :out],
            h_fin[:B, :lat],
            theta[:, :B, :lat].astype(jnp.float32))


def gatel0rd_cell(x_t, h_tm1, packed, *, batch_tile=None):
    """Single-step cell API, matching the module's forward: (y_t, h_t, Theta_t)."""
    y, h_fin, theta = gatel0rd_sequence(x_t[None], h_tm1, packed,
                                        batch_tile=batch_tile)
    return y[0], h_fin, theta[0]


def init_params(key, input_dim, latent_dim, output_dim):
    """Synthetic init mimicking nn.Linear default (uniform +/- 1/sqrt(fan_in)).

    PyTorch Linear on concat(x, h) has W: [out, input_dim+latent_dim]; stored
    here pre-split and transposed: Wx: [input_dim, out], Wh: [latent_dim, out].
    """
    fan_in = input_dim + latent_dim
    bound = 1.0 / jnp.sqrt(fan_in)
    keys = jax.random.split(key, 12)

    def u(k, shape):
        return jax.random.uniform(k, shape, jnp.float32, -bound, bound)

    return {
        "wgx": u(keys[0], (input_dim, latent_dim)),
        "wgh": u(keys[1], (latent_dim, latent_dim)),
        "bg":  u(keys[2], (1, latent_dim)),
        "wrx": u(keys[3], (input_dim, latent_dim)),
        "wrh": u(keys[4], (latent_dim, latent_dim)),
        "br":  u(keys[5], (1, latent_dim)),
        "wpx": u(keys[6], (input_dim, output_dim)),
        "wph": u(keys[7], (latent_dim, output_dim)),
        "bp":  u(keys[8], (1, output_dim)),
        "wox": u(keys[9], (input_dim, output_dim)),
        "woh": u(keys[10], (latent_dim, output_dim)),
        "bo":  u(keys[11], (1, output_dim)),
    }


def reference_sequence(x_seq, h0, p):
    """Pure-JAX f32 reference: the module's eval-mode forward scanned over T."""
    def step(h, x):
        i_t = x @ p["wgx"] + h @ p["wgh"] + p["bg"]
        lam = jnp.maximum(jnp.tanh(i_t), 0.0)
        theta = (lam > 0.0).astype(jnp.float32)
        h_hat = jnp.tanh(x @ p["wrx"] + h @ p["wrh"] + p["br"])
        h_t = lam * h_hat + (1.0 - lam) * h
        y_hat = jnp.tanh(x @ p["wpx"] + h_t @ p["wph"] + p["bp"])
        o = jax.nn.sigmoid(x @ p["wox"] + h_t @ p["woh"] + p["bo"])
        return h_t, (y_hat * o, h_t, theta, i_t)

    h_fin, (ys, hs, thetas, i_ts) = jax.lax.scan(step, h0, x_seq)
    return ys, hs, thetas, i_ts, h_fin


if __name__ == "__main__":
    seq_len, batch, input_dim, latent_dim, output_dim = 6, 4, 16, 32, 24

    key = jax.random.PRNGKey(0)
    k_params, k_x, k_h = jax.random.split(key, 3)
    params = init_params(k_params, input_dim, latent_dim, output_dim)
    packed = pack_params(params)

    x_seq = jax.random.normal(k_x, (seq_len, batch, input_dim), jnp.float32)
    h_0 = jax.random.normal(k_h, (batch, latent_dim), jnp.float32)

    # Fused-time-loop kernel (one pallas_call for the whole sequence).
    y_seq, h_fin, theta_seq = gatel0rd_sequence(x_seq, h_0, packed)
    jax.block_until_ready((y_seq, h_fin, theta_seq))

    # Correctness check against a pure-JAX f32 reference
    # (bf16 MXU operands => loosened tolerance; Heaviside compared away from 0).
    y_ref, h_ref_seq, th_ref, i_ref, h_fin_ref = reference_sequence(x_seq, h_0, params)
    assert y_seq.shape == (seq_len, batch, output_dim)
    assert h_fin.shape == (batch, latent_dim)
    assert theta_seq.shape == (seq_len, batch, latent_dim)
    assert jnp.allclose(y_seq, y_ref, atol=5e-2), "y_t mismatch"
    assert jnp.allclose(h_fin, h_fin_ref, atol=5e-2), "h_t mismatch"
    away_from_boundary = jnp.abs(i_ref) > 5e-2
    assert bool(jnp.all(jnp.where(away_from_boundary, theta_seq == th_ref, True))), \
        "Theta_t mismatch"

    # Single-step cell API (T=1) matches the module's per-step forward.
    y1, h1, th1 = gatel0rd_cell(x_seq[0], h_0, packed)
    jax.block_until_ready((y1, h1, th1))
    assert jnp.allclose(y1, y_ref[0], atol=5e-2), "cell y_t mismatch"
    assert jnp.allclose(h1, h_ref_seq[0], atol=5e-2), "cell h_t mismatch"

    print("KERNEL_OK")
</pallas_src>

<mosaic_0001>
module attributes {stable_mosaic.version = 11 : i64} {
  func.func @_gatel0rd_kernel(%arg0: i32, %arg1: i32, %arg2: memref<1x32x16xbf16, #tpu.memory_space<vmem>>, %arg3: memref<32x128xf32, #tpu.memory_space<vmem>>, %arg4: memref<16x512xbf16, #tpu.memory_space<vmem>>, %arg5: memref<128x256xbf16, #tpu.memory_space<vmem>>, %arg6: memref<128x256xbf16, #tpu.memory_space<vmem>>, %arg7: memref<1x512xf32, #tpu.memory_space<vmem>>, %arg8: memref<1x32x128xf32, #tpu.memory_space<vmem>>, %arg9: memref<1x32x128xbf16, #tpu.memory_space<vmem>>, %arg10: memref<32x128xf32, #tpu.memory_space<vmem>>, %arg11: memref<32x128xf32, #tpu.memory_space<vmem>>) attributes {dimension_semantics = [#tpu.dimension_semantics<parallel>, #tpu.dimension_semantics<arbitrary>], iteration_bounds = array<i64: 1, 6>, scalar_prefetch = 0 : i64, scratch_operands = 1 : i64, tpu.core_type = #tpu.core_type<tc>, window_params = [{transform_indices = @transform_0, window_bounds = array<i64: 1, 32, 16>}, {transform_indices = @transform_1, window_bounds = array<i64: 32, 128>}, {pipeline_mode = #tpu.pipeline_mode<synchronous>, transform_indices = @transform_2, window_bounds = array<i64: 16, 512>}, {pipeline_mode = #tpu.pipeline_mode<synchronous>, transform_indices = @transform_3, window_bounds = array<i64: 128, 256>}, {pipeline_mode = #tpu.pipeline_mode<synchronous>, transform_indices = @transform_4, window_bounds = array<i64: 128, 256>}, {pipeline_mode = #tpu.pipeline_mode<synchronous>, transform_indices = @transform_5, window_bounds = array<i64: 1, 512>}, {transform_indices = @transform_6, window_bounds = array<i64: 1, 32, 128>}, {transform_indices = @transform_7, window_bounds = array<i64: 1, 32, 128>}, {transform_indices = @transform_8, window_bounds = array<i64: 32, 128>}]} {
    %c0_i32 = arith.constant 0 : i32
    %0 = arith.cmpi eq, %arg1, %c0_i32 : i32
    %1 = arith.extui %0 : i1 to i32
    %c0_i32_0 = arith.constant 0 : i32
    %2 = arith.cmpi ne, %1, %c0_i32_0 : i32
    scf.if %2 {
      %c0_28 = arith.constant 0 : index
      %c0_29 = arith.constant 0 : index
      %58 = vector.load %arg3[%c0_28, %c0_29] : memref<32x128xf32, #tpu.memory_space<vmem>>, vector<32x128xf32>
      %c0_30 = arith.constant 0 : index
      %c0_31 = arith.constant 0 : index
      %59 = vector.load %arg11[%c0_30, %c0_31] : memref<32x128xf32, #tpu.memory_space<vmem>>, vector<32x128xf32>
      tpu.vector_store %arg11[%c0_30, %c0_31], %58 {strides = array<i32>} : memref<32x128xf32, #tpu.memory_space<vmem>>, vector<32x128xf32>,
    } else {
    }
    %c0 = arith.constant 0 : index
    %c0_1 = arith.constant 0 : index
    %3 = vector.load %arg11[%c0, %c0_1] : memref<32x128xf32, #tpu.memory_space<vmem>>, vector<32x128xf32>
    %c0_2 = arith.constant 0 : index
    %c0_3 = arith.constant 0 : index
    %c0_4 = arith.constant 0 : index
    %4 = vector.load %arg2[%c0_2, %c0_3, %c0_4] : memref<1x32x16xbf16, #tpu.memory_space<vmem>>, vector<1x32x16xbf16>
    %5 = vector.shape_cast %4 : vector<1x32x16xbf16> to vector<32x16xbf16>
    %c0_5 = arith.constant 0 : index
    %c0_6 = arith.constant 0 : index
    %6 = vector.load %arg4[%c0_5, %c0_6] : memref<16x512xbf16, #tpu.memory_space<vmem>>, vector<16x512xbf16>
    %cst = arith.constant dense<0.000000e+00> : vector<32x512xf32>
    %7 = tpu.matmul %5, %6, %cst {dimension_numbers = #tpu.dot_dimension_numbers<[1], [0], [0], [1], [0, 0, 1, 1], [], []>} : vector<32x16xbf16>, vector<16x512xbf16>, vector<32x512xf32> -> vector<32x512xf32>
    %c0_7 = arith.constant 0 : index
    %c0_8 = arith.constant 0 : index
    %8 = vector.load %arg7[%c0_7, %c0_8] : memref<1x512xf32, #tpu.memory_space<vmem>>, vector<1x512xf32>
    %9 = vector.broadcast %8 : vector<1x512xf32> to vector<32x512xf32>
    %10 = arith.addf %7, %9 : vector<32x512xf32>
    %11 = arith.truncf %3 : vector<32x128xf32> to vector<32x128xbf16>
    %c0_9 = arith.constant 0 : index
    %c0_10 = arith.constant 0 : index
    %12 = vector.load %arg5[%c0_9, %c0_10] : memref<128x256xbf16, #tpu.memory_space<vmem>>, vector<128x256xbf16>
    %cst_11 = arith.constant dense<0.000000e+00> : vector<32x256xf32>
    %13 = tpu.matmul %11, %12, %cst_11 {dimension_numbers = #tpu.dot_dimension_numbers<[1], [0], [0], [1], [0, 0, 1, 1], [], []>} : vector<32x128xbf16>, vector<128x256xbf16>, vector<32x256xf32> -> vector<32x256xf32>
    %14 = vector.extract_strided_slice %10 {offsets = [0, 0], sizes = [32, 128], strides = [1, 1]} : vector<32x512xf32> to vector<32x128xf32>
    %15 = vector.extract_strided_slice %13 {offsets = [0, 0], sizes = [32, 128], strides = [1, 1]} : vector<32x256xf32> to vector<32x128xf32>
    %16 = arith.addf %14, %15 : vector<32x128xf32>
    %17 = vector.extract_strided_slice %10 {offsets = [0, 128], sizes = [32, 128], strides = [1, 1]} : vector<32x512xf32> to vector<32x128xf32>
    %18 = vector.extract_strided_slice %13 {offsets = [0, 128], sizes = [32, 128], strides = [1, 1]} : vector<32x256xf32> to vector<32x128xf32>
    %19 = arith.addf %17, %18 : vector<32x128xf32>
    %20 = vector.extract_strided_slice %10 {offsets = [0, 256], sizes = [32, 256], strides = [1, 1]} : vector<32x512xf32> to vector<32x256xf32>
    %21 = math.tanh %16 : vector<32x128xf32>
    %cst_12 = arith.constant 0.000000e+00 : f32
    %22 = vector.broadcast %cst_12 : f32 to vector<32x128xf32>
    %23 = arith.maximumf %21, %22 : vector<32x128xf32>
    %cst_13 = arith.constant 0.000000e+00 : f32
    %24 = vector.broadcast %cst_13 : f32 to vector<32x128xf32>
    %25 = arith.cmpf ogt, %23, %24 : vector<32x128xf32>
    %26 = math.tanh %19 : vector<32x128xf32>
    %27 = arith.mulf %23, %26 : vector<32x128xf32>
    %cst_14 = arith.constant 1.000000e+00 : f32
    %28 = vector.broadcast %cst_14 : f32 to vector<32x128xf32>
    %29 = arith.subf %28, %23 : vector<32x128xf32>
    %30 = arith.mulf %29, %3 : vector<32x128xf32>
    %31 = arith.addf %27, %30 : vector<32x128xf32>
    %32 = arith.truncf %31 : vector<32x128xf32> to vector<32x128xbf16>
    %c0_15 = arith.constant 0 : index
    %c0_16 = arith.constant 0 : index
    %33 = vector.load %arg6[%c0_15, %c0_16] : memref<128x256xbf16, #tpu.memory_space<vmem>>, vector<128x256xbf16>
    %cst_17 = arith.constant dense<0.000000e+00> : vector<32x256xf32>
    %34 = tpu.matmul %32, %33, %cst_17 {dimension_numbers = #tpu.dot_dimension_numbers<[1], [0], [0], [1], [0, 0, 1, 1], [], []>} : vector<32x128xbf16>, vector<128x256xbf16>, vector<32x256xf32> -> vector<32x256xf32>
    %35 = arith.addf %34, %20 : vector<32x256xf32>
    %36 = vector.extract_strided_slice %35 {offsets = [0, 0], sizes = [32, 128], strides = [1, 1]} : vector<32x256xf32> to vector<32x128xf32>
    %37 = math.tanh %36 : vector<32x128xf32>
    %38 = vector.extract_strided_slice %35 {offsets = [0, 128], sizes = [32, 128], strides = [1, 1]} : vector<32x256xf32> to vector<32x128xf32>
    %39 = arith.negf %38 : vector<32x128xf32>
    %40 = math.exp %39 : vector<32x128xf32>
    %cst_18 = arith.constant 1.000000e+00 : f32
    %41 = vector.broadcast %cst_18 : f32 to vector<32x128xf32>
    %42 = arith.addf %41, %40 : vector<32x128xf32>
    %43 = arith.divf %41, %42 : vector<32x128xf32>
    %44 = arith.mulf %37, %43 : vector<32x128xf32>
    %c0_19 = arith.constant 0 : index
    %c0_20 = arith.constant 0 : index
    %45 = vector.load %arg11[%c0_19, %c0_20] : memref<32x128xf32, #tpu.memory_space<vmem>>, vector<32x128xf32>
    tpu.vector_store %arg11[%c0_19, %c0_20], %31 {strides = array<i32>} : memref<32x128xf32, #tpu.memory_space<vmem>>, vector<32x128xf32>,
    %c0_21 = arith.constant 0 : index
    %c0_22 = arith.constant 0 : index
    %c0_23 = arith.constant 0 : index
    %46 = vector.load %arg8[%c0_21, %c0_22, %c0_23] : memref<1x32x128xf32, #tpu.memory_space<vmem>>, vector<1x32x128xf32>
    %47 = vector.shape_cast %46 : vector<1x32x128xf32> to vector<32x128xf32>
    %48 = vector.shape_cast %44 : vector<32x128xf32> to vector<1x32x128xf32>
    tpu.vector_store %arg8[%c0_21, %c0_22, %c0_23], %48 {strides = array<i32>} : memref<1x32x128xf32, #tpu.memory_space<vmem>>, vector<1x32x128xf32>,
    %49 = arith.extui %25 : vector<32x128xi1> to vector<32x128xi32>
    %50 = arith.sitofp %49 : vector<32x128xi32> to vector<32x128xf32>
    %51 = arith.truncf %50 : vector<32x128xf32> to vector<32x128xbf16>
    %c0_24 = arith.constant 0 : index
    %c0_25 = arith.constant 0 : index
    %c0_26 = arith.constant 0 : index
    %52 = vector.load %arg9[%c0_24, %c0_25, %c0_26] : memref<1x32x128xbf16, #tpu.memory_space<vmem>>, vector<1x32x128xbf16>
    %53 = vector.shape_cast %52 : vector<1x32x128xbf16> to vector<32x128xbf16>
    %54 = vector.shape_cast %51 : vector<32x128xbf16> to vector<1x32x128xbf16>
    tpu.vector_store %arg9[%c0_24, %c0_25, %c0_26], %54 {strides = array<i32>} : memref<1x32x128xbf16, #tpu.memory_space<vmem>>, vector<1x32x128xbf16>,
    %c5_i32 = arith.constant 5 : i32
    %55 = arith.cmpi eq, %arg1, %c5_i32 : i32
    %56 = arith.extui %55 : i1 to i32
    %c0_i32_27 = arith.constant 0 : i32
    %57 = arith.cmpi ne, %56, %c0_i32_27 : i32
    scf.if %57 {
      %c0_28 = arith.constant 0 : index
      %c0_29 = arith.constant 0 : index
      %58 = vector.load %arg10[%c0_28, %c0_29] : memref<32x128xf32, #tpu.memory_space<vmem>>, vector<32x128xf32>
      tpu.vector_store %arg10[%c0_28, %c0_29], %31 {strides = array<i32>} : memref<32x128xf32, #tpu.memory_space<vmem>>, vector<32x128xf32>,
    } else {
    }
    return
  }
  func.func @transform_0(%arg0: i32, %arg1: i32) -> (i32, i32, i32) {
    %c0_i32 = arith.constant 0 : i32
    %c0_i32_0 = arith.constant 0 : i32
    return %arg1, %arg0, %c0_i32 : i32, i32, i32
  }
  func.func @transform_1(%arg0: i32, %arg1: i32) -> (i32, i32) {
    %c0_i32 = arith.constant 0 : i32
    %c0_i32_0 = arith.constant 0 : i32
    return %arg0, %c0_i32 : i32, i32
  }
  func.func @transform_2(%arg0: i32, %arg1: i32) -> (i32, i32) {
    %c0_i32 = arith.constant 0 : i32
    %c0_i32_0 = arith.constant 0 : i32
    %c0_i32_1 = arith.constant 0 : i32
    return %c0_i32, %c0_i32_0 : i32, i32
  }
  func.func @transform_3(%arg0: i32, %arg1: i32) -> (i32, i32) {
    %c0_i32 = arith.constant 0 : i32
    %c0_i32_0 = arith.constant 0 : i32
    %c0_i32_1 = arith.constant 0 : i32
    return %c0_i32, %c0_i32_0 : i32, i32
  }
  func.func @transform_4(%arg0: i32, %arg1: i32) -> (i32, i32) {
    %c0_i32 = arith.constant 0 : i32
    %c0_i32_0 = arith.constant 0 : i32
    %c0_i32_1 = arith.constant 0 : i32
    return %c0_i32, %c0_i32_0 : i32, i32
  }
  func.func @transform_5(%arg0: i32, %arg1: i32) -> (i32, i32) {
    %c0_i32 = arith.constant 0 : i32
    %c0_i32_0 = arith.constant 0 : i32
    %c0_i32_1 = arith.constant 0 : i32
    return %c0_i32, %c0_i32_0 : i32, i32
  }
  func.func @transform_6(%arg0: i32, %arg1: i32) -> (i32, i32, i32) {
    %c0_i32 = arith.constant 0 : i32
    %c0_i32_0 = arith.constant 0 : i32
    return %arg1, %arg0, %c0_i32 : i32, i32, i32
  }
  func.func @transform_7(%arg0: i32, %arg1: i32) -> (i32, i32, i32) {
    %c0_i32 = arith.constant 0 : i32
    %c0_i32_0 = arith.constant 0 : i32
    return %arg1, %arg0, %c0_i32 : i32, i32, i32
  }
  func.func @transform_8(%arg0: i32, %arg1: i32) -> (i32, i32) {
    %c0_i32 = arith.constant 0 : i32
    %c0_i32_0 = arith.constant 0 : i32
    return %arg0, %c0_i32 : i32, i32
  }
}

</mosaic_0001>

<bundles_post_ra>
// kernel: tpu_custom_call.1
= control target key start
LH: loop header
LB: loop body
LE: loop exit
PB: predicated region body
PF: predicated region fallthrough
CT: control target
= control target key end

     0   :  { %s2157_s0 = inlined_call_operand.vmem [shape: bf16[6,32,16], index: 0, kind: input, shape index: {}]   ;;  %s2158_s1 = inlined_call_operand.hbm [shape: f32[32,128], index: 1, kind: input, shape index: {}]   ;;  %s2159_s2 = inlined_call_operand.hbm [shape: bf16[16,512], index: 2, kind: input, shape index: {}]   ;;  %s2160_s3 = inlined_call_operand.vmem [shape: bf16[128,256], index: 3, kind: input, shape index: {}]   ;;  %s2161_s4 = inlined_call_operand.hbm [shape: bf16[128,256], index: 4, kind: input, shape index: {}]   ;;  %s2162_s5 = inlined_call_operand.vmem [shape: f32[1,512], index: 5, kind: input, shape index: {}]   ;;  %s2163_s6 = inlined_call_operand.hbm [shape: f32[6,32,128], index: 6, kind: output, shape index: {0}]   ;;  %s2164_s7 = inlined_call_operand.hbm [shape: bf16[6,32,128], index: 7, kind: output, shape index: {1}]   ;;  %s2165_s8 = inlined_call_operand.hbm [shape: f32[32,128], index: 8, kind: output, shape index: {2}]  }
   0x1   :  { %2170 = sst [smem:[#allocation19_spill]] %s2157_s0 }
   0x2   :  { %2171 = sst [smem:[#allocation20_spill]] %s2158_s1 }
   0x3   :  { %2172 = sst [smem:[#allocation21_spill]] %s2159_s2 }
   0x4   :  { %14 = vsyncpa [#allocation4], 0 }
   0x5   :  { %15 = vsyncpa [#allocation7], 0 }
   0x6   :  { %16 = vsyncpa [#allocation5], 0 }
   0x7   :  { %18 = vsyncpa [#allocation5 + $0x1], 0 }
   0x8   :  { %19 = vsyncpa [#allocation11], 0 }
   0x9   :  { %21 = vsyncpa [#allocation11 + $0x1], 0  ;;  %s1809_s27 = smov 0   ;;  %s1811_s28 = smov 0  }
   0xa   :  { %s1813_s29 = smov 0   ;;  %s1815_s30 = smov 0  }
   0xb   :  { %s1817_s9 = smov 0   ;;  %s1819_s10 = smov 0  }
   0xc LB: > { %s1840_s11 = sadd.s32 4294967295, %s1746_s10   ;;  %s2168_s12 = sadd.s32 4294967294, %s1746_s10   ;;  %s1746_s10 = sphi %s1819_s10, %s27_s10   ;;  %s1742_s9 = sphi %s1817_s9, %s2195_s9   ;;  %s1738_s30 = sphi %s1815_s30, %s2194_s30   ;;  %s1734_s29 = sphi %s1813_s29, %s2193_s29   ;;  %s1730_s28 = sphi %s1811_s28, %s2192_s28   ;;  %s1726_s27 = sphi %s1809_s27, %s2191_s27  }
   0xd   : > { %s36_s13 = sadd.s32 1, %s1742_s9  ;;  %s186_s14 = sadd.s32 1, %s1734_s29 }
   0xe   : > { %p37_p0 = scmp.ge.s32.totalorder %s36_s13, 6  ;;  %p196_p1 = scmp.ne.s32.totalorder %s1734_s29, %s1730_s28 }
   0xf   : > { %p2166_p2 = scmp.eq.s32.totalorder %s1840_s11, 5  ;;  %p202_p3 = scmp.ne.s32.totalorder %s1730_s28, %s1726_s27 }
  0x10   : > { %s2197_s13 = smov (%p37_p0, %s36_s13), 0  ;;  %p203_p5 = scmp.eq.s32.totalorder %s2168_s12, 5 }
  0x11   : > { %2173 = sst [smem:[#allocation18_spill]] %s2197_s13  ;;  %p1854_p4 = por %p2166_p2, %p196_p1 }
  0x12   : > { %s181_s16 = ssub.s32 %s1742_s9, %s2197_s13  ;;  %p1229_p6 = scmp.ge.s32.totalorder %s1746_s10, 1 }
  0x13   : > { %p184_p7 = scmp.eq.s32.totalorder %s181_s16, 0  ;;  %p1863_p8 = por %p203_p5, %p202_p3 }
  0x14   : > { %p264_p9 = scmp.lt.s32.totalorder %s1746_s10, 7  ;;  %p2167_p11 = scmp.eq.s32.totalorder %s1840_s11, 0 }
  0x15   : > { %s1869_s18 = scalar_select %p184_p7, %s1734_s29, %s186_s14  }
  0x16   : > { %p1871_p10 = pnand %p1229_p6, %p264_p9  ;;  %s1748_s20 = smov [#allocation6]  }
  0x17   : > { %s292_s21 = sshll.u32 %s1748_s20, 4  ;;  %s1749_s23 = smov [#allocation3]   ;;  %s293_s21 = int_to_ptr.vmem [resolvable:$true] %s292_s21 }
  0x18   : > { %p1342_p12 = pneg %p1871_p10  ;;  %s279_s24 = sshll.u32 %s1749_s23, 4  ;;  %s280_s24 = int_to_ptr.vmem [resolvable:$true] %s279_s24 }
  0x19   : > { %s1537_s25 = scalar_lea.vmem %s293_s21, 512  ;;  %p1545_p6 = scmp.lt.s32.totalorder %s293_s21, %s293_s21 }
  0x1a   : > { %p1880_p13 = pnand %p2167_p11, %p1342_p12  ;;  %p1538_p1 = scmp.ne.s32.totalorder %s293_s21, %s1537_s25 }
  0x1b   : > { %p1546_p7 = scmp.lt.s32.totalorder %s1537_s25, %s1537_s25 }
  0x1c   : > { %p1528_p0 = pneg %p1880_p13 }
  0x1d   : > { %p1547_p9 = por %p1546_p7, %p1545_p6 }
  0x1e   : > { %p1540_p3 = pnand %p1538_p1, %p1528_p0 }
  0x20   : > { %p1541_p5 = pneg %p1540_p3 }
  0x22   : > { %p1548_p2 = pnand %p1547_p9, %p1541_p5 }
  0x24   : > { %1551 = shalt.err (!%p1548_p2)
}
  0x25   : > { %s1750_s26 = smov 256   ;;  %s1751_s14 = smov 16  }
  0x26   : > { %s2178_s2 = sld [smem:[#allocation21_spill]]  ;;  %s1563_s23 = scalar_lea.vmem %s280_s24, 512 }
  0x27   : > { %p1564_p12 = scmp.ne.s32.totalorder %s280_s24, %s1563_s23  ;;  %p1571_p11 = scmp.lt.s32.totalorder %s280_s24, %s280_s24 }
  0x28   : > { %p1572_p6 = scmp.lt.s32.totalorder %s1563_s23, %s1563_s23 }
  0x29   : > { %p1566_p1 = pnand %p1564_p12, %p1528_p0 }
  0x2a   : > { %p1573_p5 = por %p1572_p6, %p1571_p11 }
  0x2b   : > { %p1567_p3 = pneg %p1566_p1 }
  0x2c   : > { %1348 = dma.hbm_to_vmem [thread:$0]  (!%p1880_p13), %s2178_s2, 512, %s293_s21, [#allocation7], %s1750_s26, %s1750_s26, %s1751_s14  }
  0x2d   : > { %p1574_p2 = pnand %p1573_p5, %p1567_p3 }
  0x2f   : > { %1577 = shalt.err (!%p1574_p2)
}
  0x30   : > { %s1752_s25 = smov 128   ;;  %s1753_s12 = smov 8  }
  0x31   : > { %s2179_s1 = sld [smem:[#allocation20_spill]]  ;;  %s1754_s21 = smov [#allocation8]  }
  0x32   : > { %s308_s26 = sshll.u32 %s1754_s21, 4  ;;  %s309_s26 = int_to_ptr.vmem [resolvable:$true] %s308_s26 }
  0x33   : > { %s1589_s14 = scalar_lea.vmem %s309_s26, 2048  ;;  %p1597_p12 = scmp.lt.s32.totalorder %s309_s26, %s309_s26 }
  0x34   : > { %p1590_p7 = scmp.ne.s32.totalorder %s309_s26, %s1589_s14  ;;  %p1598_p1 = scmp.lt.s32.totalorder %s1589_s14, %s1589_s14 }
  0x36   : > { %p1592_p9 = pnand %p1590_p7, %p1528_p0  ;;  %p1599_p3 = por %p1598_p1, %p1597_p12 }
  0x37   : > { %1345 = dma.hbm_to_vmem [thread:$0]  (!%p1880_p13), %s2179_s1, 512, %s280_s24, [#allocation4], %s1752_s25, %s1752_s25, %s1753_s12  }
  0x38   : > { %p1593_p11 = pneg %p1592_p9 }
  0x3a   : > { %p1600_p6 = pnand %p1599_p3, %p1593_p11 }
  0x3c   : > { %1603 = shalt.err (!%p1600_p6)
}
  0x3d   : > { %1351 = dma.hbm_to_vmem [thread:$0]  (!%p1880_p13), %s2161_s4, 2048, %s309_s26, [#allocation7], %s1752_s25, %s1752_s25, %s1753_s12  }
  0x3e   : > { %340 = sbr.rel (%p1871_p10) target bundleno = 661 (0x295), region = 44  ;;  %p2180_p5 = scmp.eq.s32.totalorder (!%p1871_p10), %s1840_s11, 0 }
  0x43   : > { %1705 = dma.done.wait (%p2180_p5), [#allocation4], 512   ;;  %p2181_p0 = pmov %p2180_p5 }
  0x45   : > { %1707 = vsyncadd (%p2181_p0), [#allocation4], 4294966784  ;;  %p2182_p2 = pmov %p2181_p0 }
  0x46   : > { %p2183_p7 = pmov %p2181_p0 }
  0x47   : > { %1709 = dma.done.wait (%p2182_p2), [#allocation7], 2560  }
  0x48   : > { %1711 = vsyncadd (%p2183_p7), [#allocation7], 4294964736  ;;  %s1921_s13 = sand.u32 1, %s1730_s28   ;;  %p392_p10 = scmp.lt.s32.totalorder %s1738_s30, 5 }
  0x49   : > { %s1238_s12 = sshll.u32 %s1921_s13, 5  ;;  %s1239_s19 = sshll.u32 %s1921_s13, 4 }
  0x4a   : > { %s393_s22 = scalar_select %p392_p10, %s1738_s30, 5 }
  0x4b   : > { %s2184_s0 = sld [smem:[#allocation19_spill]]  ;;  %s1932_s26 = scalar_lea.vmem [#allocation9], %s1238_s12 }
  0x4c   : > { %s1308_s24 = sshll.u32 %s393_s22, 4  ;;  %s1934_s14 = scalar_lea.vmem [#allocation10], %s1239_s19 }
  0x4d   : > { %p1242_p13 = scmp.ne.s32.totalorder %s1738_s30, 0 }
  0x4f   : > { %409 = sbr.rel (%p1242_p13) target bundleno = 87 (0x57), region = 60 }
  0x51   : > { %s1930_s21 = scalar_lea.vmem %s2184_s0, %s1308_s24 }
  0x54   : > { %v410_v0 = vld [vmem:[#allocation3] sm:$0xff]  ;;  %v411_v1 = vld [vmem:[#allocation3 + $0x8] sm:$0xff]  ;;  %v412_v2 = vld [vmem:[#allocation3 + $0x10] sm:$0xff] }
  0x55   : > { %414 = vst [vmem:[#allocation2 + $0x10] sm:$0xff] %v410_v0  ;;  %415 = vst [vmem:[#allocation2] sm:$0xff] %v411_v1  ;;  %v413_v3 = vld [vmem:[#allocation3 + $0x18] sm:$0xff] }
  0x56   : > { %416 = vst [vmem:[#allocation2 + $0x18] sm:$0xff] %v412_v2  ;;  %417 = vst [vmem:[#allocation2 + $0x8] sm:$0xff] %v413_v3 }
  0x57 PF: > { %v1430_v4 = vld [vmem:[#allocation6 + $0x4] ss:$16 sps:$4 sm:$0xff]   ;;  %v1432_v5 = vld [vmem:[#allocation6] ss:$16 sps:$4 sm:$0xff]   ;;  %v1755_v6 = vmov 0   ;;  %vm482_vm0 = vcmask 130048   ;;  %v432_v52 = vlaneseq }
  0x58   : > { %521 = vmatprep.mubr.bf16.mxu0 %v1755_v6  ;;  %574 = vmatprep.mubr.bf16.mxu1 %v1755_v6  ;;  %v1433_v7 = vld [vmem:[%s1930_s21] sm:$0xff]   ;;  %v1434_v8 = vld [vmem:[%s2160_s3 + $0x70] ss:$8 sps:$4 sm:$0xff]   ;;  %v1436_v9 = vld [vmem:[%s2160_s3 + $0x74] ss:$8 sps:$4 sm:$0xff]   ;;  %p1297_p9 = scmp.ne.s32.totalorder %s1738_s30, 5 }
  0x59   : > { %503 = vmatprep.subr.bf16.mxu0 %v1430_v4  ;;  %v1439_v10 = vld [vmem:[%s2160_s3 + $0x64] ss:$8 sps:$4 sm:$0xff]   ;;  %v1437_v11 = vld [vmem:[%s2160_s3 + $0x60] ss:$8 sps:$4 sm:$0xff]   ;;  %v1442_v12 = vld [vmem:[%s2160_s3 + $0x54] ss:$8 sps:$4 sm:$0xff]  }
  0x5a   : > { %504 = vmatpush1.bf16.msra.mxu0 %v1432_v5  ;;  %v1449_v13 = vld [vmem:[%s1930_s21 + $0x8] sm:$0xff]   ;;  %v1440_v14 = vld [vmem:[%s2160_s3 + $0x50] ss:$8 sps:$4 sm:$0xff]   ;;  %v1448_v17 = vld [vmem:[%s2160_s3 + $0x34] ss:$8 sps:$4 sm:$0xff]   ;;  %v2010_v55 = vshrl.u32 %v432_v52, 7 }
  0x5b   : > { %693 = vmatprep.subr.bf16.mxu0 %v1436_v9  ;;  %v1445_v15 = vld [vmem:[%s2160_s3 + $0x44] ss:$8 sps:$4 sm:$0xff]   ;;  %v1443_v16 = vld [vmem:[%s2160_s3 + $0x40] ss:$8 sps:$4 sm:$0xff]   ;;  %v1446_v18 = vld [vmem:[%s2160_s3 + $0x30] ss:$8 sps:$4 sm:$0xff]  }
  0x5c   : > { %v1452_v19 = vld [vmem:[%s2160_s3 + $0x24] ss:$8 sps:$4 sm:$0xff]   ;;  %v1450_v20 = vld [vmem:[%s2160_s3 + $0x20] ss:$8 sps:$4 sm:$0xff]   ;;  %v1455_v21 = vld [vmem:[%s2160_s3 + $0x14] ss:$8 sps:$4 sm:$0xff]  }
  0x5d   : > { %1249 = vmatmul.mubr.msk.bf16.vlgmr.msra.gmra.mxu0 %vm482_vm0, %v1433_v7  ;;  %v1453_v22 = vld [vmem:[%s2160_s3 + $0x10] ss:$8 sps:$4 sm:$0xff]   ;;  %v1458_v23 = vld [vmem:[%s2160_s3 + $0x4] ss:$8 sps:$4 sm:$0xff]   ;;  %v1456_v24 = vld [vmem:[%s2160_s3] ss:$8 sps:$4 sm:$0xff]  }
  0x5e   : > { %694 = vmatpush1.bf16.msra.mxu0 %v1434_v8  ;;  %531 = vmatprep.mubr.bf16.mxu0 %v1755_v6  ;;  %v1993_v25 = vld [vmem:[#allocation2 + $0x10] sm:$0xff]  ;;  %v1995_v26 = vld [vmem:[#allocation2] sm:$0xff]  ;;  %v2000_v28 = vld [vmem:[#allocation2 + $0x18] sm:$0xff]  ;;  %v434_v57 = vsub.s32 0, %v2010_v55  ;;  %v438_v59 = vsub.s32 1, %v2010_v55 }
  0x5f   : > { %695 = vmatprep.subr.bf16.mxu0 %v1439_v10  ;;  %v595_v27 = vpack.c.bf16 %v1995_v26, %v1993_v25  ;;  %v2002_v29 = vld [vmem:[#allocation2 + $0x8] sm:$0xff]  ;;  %v1464_v33 = vld [vmem:[#allocation8 + $0x74] ss:$8 sps:$4 sm:$0xff]   ;;  %v1462_v34 = vld [vmem:[#allocation8 + $0x70] ss:$8 sps:$4 sm:$0xff]  }
  0x60   : > { %v596_v30 = vpack.c.bf16 %v2002_v29, %v2000_v28  ;;  %v1459_v31 = vld [vmem:[#allocation6 + $0xc] ss:$16 sps:$4 sm:$0xff]   ;;  %v1461_v32 = vld [vmem:[#allocation6 + $0x8] ss:$16 sps:$4 sm:$0xff]   ;;  %v2016_v58 = vld [vmem:[%s2162_s5] sm:$0xf] }
  0x61   : > { %556 = vmatprep.subr.bf16.mxu1 %v1459_v31  ;;  %v1467_v35 = vld [vmem:[#allocation8 + $0x64] ss:$8 sps:$4 sm:$0xff]   ;;  %v1465_v36 = vld [vmem:[#allocation8 + $0x60] ss:$8 sps:$4 sm:$0xff]   ;;  %v1470_v37 = vld [vmem:[#allocation8 + $0x54] ss:$8 sps:$4 sm:$0xff]   ;;  %v435_v61 = vrot.slane %v2016_v58, %v434_v57  ;;  %v439_v62 = vrot.slane %v2016_v58, %v438_v59 }
  0x62   : > { %696 = vmatpush1.bf16.msra.mxu0 %v1437_v11  ;;  %557 = vmatpush1.bf16.msra.mxu1 %v1461_v32  ;;  %v1468_v38 = vld [vmem:[#allocation8 + $0x50] ss:$8 sps:$4 sm:$0xff]   ;;  %v1473_v39 = vld [vmem:[#allocation8 + $0x44] ss:$8 sps:$4 sm:$0xff]   ;;  %v1471_v40 = vld [vmem:[#allocation8 + $0x40] ss:$8 sps:$4 sm:$0xff]  }
  0x63   : > { %697 = vmatprep.subr.bf16.mxu0 %v1442_v12  ;;  %884 = vmatprep.subr.bf16.mxu1 %v1464_v33  ;;  %v1476_v41 = vld [vmem:[#allocation8 + $0x34] ss:$8 sps:$4 sm:$0xff]   ;;  %v1474_v42 = vld [vmem:[#allocation8 + $0x30] ss:$8 sps:$4 sm:$0xff]   ;;  %v1479_v43 = vld [vmem:[#allocation8 + $0x24] ss:$8 sps:$4 sm:$0xff]  }
  0x64   : > { %v1477_v44 = vld [vmem:[#allocation8 + $0x20] ss:$8 sps:$4 sm:$0xff]   ;;  %v1482_v45 = vld [vmem:[#allocation8 + $0x14] ss:$8 sps:$4 sm:$0xff]   ;;  %v1480_v46 = vld [vmem:[#allocation8 + $0x10] ss:$8 sps:$4 sm:$0xff]  }
  0x65   : > { %1250 = vmatmul.mubr.msk.bf16.gmra.mxu0 %vm482_vm0, %v1449_v13  ;;  %1251 = vmatmul.mubr.msk.bf16.vlgmr.msra.gmra.mxu1 %vm482_vm0, %v1433_v7  ;;  %v1485_v47 = vld [vmem:[#allocation8 + $0x4] ss:$8 sps:$4 sm:$0xff]   ;;  %v1483_v48 = vld [vmem:[#allocation8] ss:$8 sps:$4 sm:$0xff]  }
  0x66   : > { %698 = vmatpush1.bf16.msra.mxu0 %v1440_v14  ;;  %725 = vmatprep.mubr.bf16.mxu0 %v1755_v6 }
  0x67   : > { %699 = vmatprep.subr.bf16.mxu0 %v1445_v15  ;;  %885 = vmatpush1.bf16.msra.mxu1 %v1462_v34 }
  0x68   : > { %584 = vmatprep.mubr.bf16.mxu1 %v1755_v6  ;;  %886 = vmatprep.subr.bf16.mxu1 %v1467_v35 }
  0x6a   : > { %700 = vmatpush1.bf16.msra.mxu0 %v1443_v16 }
  0x6b   : > { %701 = vmatprep.subr.bf16.mxu0 %v1448_v17  ;;  %887 = vmatpush1.bf16.msra.mxu1 %v1465_v36 }
  0x6c   : > { %888 = vmatprep.subr.bf16.mxu1 %v1470_v37 }
  0x6d   : > { %1252 = vmatmul.mubr.msk.bf16.gmra.mxu1 %vm482_vm0, %v1449_v13 }
  0x6e   : > { %702 = vmatpush1.bf16.msra.mxu0 %v1446_v18  ;;  %916 = vmatprep.mubr.bf16.mxu1 %v1755_v6 }
  0x6f   : > { %703 = vmatprep.subr.bf16.mxu0 %v1452_v19  ;;  %889 = vmatpush1.bf16.msra.mxu1 %v1468_v38 }
  0x70   : > { %890 = vmatprep.subr.bf16.mxu1 %v1473_v39 }
  0x72   : > { %704 = vmatpush1.bf16.msra.mxu0 %v1450_v20 }
  0x73   : > { %705 = vmatprep.subr.bf16.mxu0 %v1455_v21  ;;  %891 = vmatpush1.bf16.msra.mxu1 %v1471_v40 }
  0x74   : > { %892 = vmatprep.subr.bf16.mxu1 %v1476_v41  ;;  %v1756_v41 = vmov 0.0  }
  0x76   : > { %706 = vmatpush1.bf16.msra.mxu0 %v1453_v22 }
  0x77   : > { %707 = vmatprep.subr.bf16.mxu0 %v1458_v23  ;;  %893 = vmatpush1.bf16.msra.mxu1 %v1474_v42 }
  0x78   : > { %894 = vmatprep.subr.bf16.mxu1 %v1479_v43 }
  0x7a   : > { %708 = vmatpush1.bf16.msra.mxu0 %v1456_v24 }
  0x7b   : > { %895 = vmatpush1.bf16.msra.mxu1 %v1477_v44 }
  0x7c   : > { %896 = vmatprep.subr.bf16.mxu1 %v1482_v45 }
  0x7d   : > { %726 = vmatmul.mubr.bf16.vlgmr.msra.gmra.mxu0 %v595_v27 }
  0x7e   : > { %735 = vmatprep.mubr.bf16.mxu0 %v1755_v6 }
  0x7f   : > { %897 = vmatpush1.bf16.msra.mxu1 %v1480_v46 }
  0x80   : > { %898 = vmatprep.subr.bf16.mxu1 %v1485_v47 }
  0x83   : > { %899 = vmatpush1.bf16.msra.mxu1 %v1483_v48 }
  0x85   : > { %736 = vmatmul.mubr.bf16.gmra.mxu0 %v596_v30 }
 0x11d   : > { %v523_v49 = vpop.f32.mrf.mxu0 }
 0x11e   : > { %v524_v0 = vadd.f32 %v523_v49, %v435_v61 }
 0x11f   : > { %v525_v50 = vpop.f32.mrf.mxu0 }
 0x120   : > { %v526_v2 = vadd.f32 %v525_v50, %v439_v62 }
 0x121   : > { %v527_v51 = vpop.f32.mrf.mxu0 }
 0x122   : > { %v528_v5 = vadd.f32 %v527_v51, %v435_v61 }
 0x123   : > { %v529_v53 = vpop.f32.mrf.mxu0 }
 0x124   : > { %v530_v9 = vadd.f32 %v529_v53, %v439_v62 }
 0x125   : > { %v533_v54 = vpop.f32.mrf.mxu0 }
 0x126   : > { %v534_v12 = vadd.f32 %v533_v54, %v435_v61 }
 0x127   : > { %v535_v56 = vpop.f32.mrf.mxu0 }
 0x128   : > { %v536_v15 = vadd.f32 %v535_v56, %v439_v62 }
 0x129   : > { %v537_v60 = vpop.f32.mrf.mxu0 }
 0x12a   : > { %v538_v18 = vadd.f32 %v537_v60, %v435_v61 }
 0x12b   : > { %v539_v63 = vpop.f32.mrf.mxu0 }
 0x12c   : > { %v540_v21 = vadd.f32 %v539_v63, %v439_v62 }
 0x13d   : > { %v727_v1 = vpop.f32.mrf.mxu0 }
 0x13e   : > { %v746_v3 = vadd.f32 %v727_v1, %v524_v0  ;;  %v576_v1 = vpop.f32.mrf.mxu1 }
 0x13f   : > { %v729_v4 = vpop.f32.mrf.mxu0 }
 0x140   : > { %1486 = vtanh.f32 %v746_v3  ;;  %v750_v7 = vadd.f32 %v729_v4, %v526_v2  ;;  %v578_v2 = vpop.f32.mrf.mxu1 }
 0x141   : > { %v731_v8 = vpop.f32.mrf.mxu0 }
 0x142   : > { %1488 = vtanh.f32 %v750_v7  ;;  %v747_v10 = vadd.f32 %v731_v8, %v528_v5  ;;  %v580_v3 = vpop.f32.mrf.mxu1  ;;  %v446_v7 = vsub.s32 3, %v2010_v55 }
 0x143   : > { %v733_v11 = vpop.f32.mrf.mxu0 }
 0x144   : > { %1490 = vtanh.f32 %v747_v10  ;;  %v751_v13 = vadd.f32 %v733_v11, %v530_v9  ;;  %v582_v4 = vpop.f32.mrf.mxu1  ;;  %v447_v8 = vrot.slane %v2016_v58, %v446_v7 }
 0x145   : > { %v737_v14 = vpop.f32.mrf.mxu0 }
 0x146   : > { %1492 = vtanh.f32 %v751_v13  ;;  %v748_v16 = vadd.f32 %v737_v14, %v534_v12  ;;  %v579_v11 = vadd.f32 %v578_v2, %v447_v8 }
 0x147   : > { %v739_v17 = vpop.f32.mrf.mxu0 }
 0x148   : > { %1494 = vtanh.f32 %v748_v16  ;;  %v752_v19 = vadd.f32 %v739_v17, %v536_v15  ;;  %v583_v15 = vadd.f32 %v582_v4, %v447_v8 }
 0x149   : > { %v741_v20 = vpop.f32.mrf.mxu0 }
 0x14a   : > { %1496 = vtanh.f32 %v752_v19  ;;  %v749_v22 = vadd.f32 %v741_v20, %v538_v18  ;;  %v442_v19 = vsub.s32 2, %v2010_v55 }
 0x14b   : > { %v743_v23 = vpop.f32.mrf.mxu0 }
 0x14c   : > { %1498 = vtanh.f32 %v749_v22  ;;  %v753_v24 = vadd.f32 %v743_v23, %v540_v21 }
 0x14d   : > { %v1487_v27 = vpop.eup %1486 }
 0x14e   : > { %v758_v30 = vmax.f32 %v1487_v27, 0.0  ;;  %1500 = vtanh.f32 %v753_v24  ;;  %v443_v27 = vrot.slane %v2016_v58, %v442_v19 }
 0x14f   : > { %v1489_v31 = vpop.eup %1488 }
 0x150   : > { %v774_v32 = vsub.f32 1.0, %v758_v30  ;;  %vm762_vm1 = vcmp.gt.f32.partialorder %v758_v30, 0.0  ;;  %v770_v35 = vmul.f32 %v1489_v31, %v758_v30  ;;  %v581_v55 = vadd.f32 %v580_v3, %v443_v27 }
 0x151   : > { %v1491_v33 = vpop.eup %1490  ;;  %v1289_v42 = vsel %vm762_vm1, 1.0, %v1756_v41 }
 0x152   : > { %v778_v34 = vmul.f32 %v774_v32, %v1993_v25  ;;  %v759_v36 = vmax.f32 %v1491_v33, 0.0 }
 0x153   : > { %v1493_v37 = vpop.eup %1492 }
 0x154   : > { %vm763_vm2 = vcmp.gt.f32.partialorder %v759_v36, 0.0  ;;  %v775_v38 = vsub.f32 1.0, %v759_v36  ;;  %v2022_v39 = vadd.f32 %v778_v34, %v770_v35  ;;  %v771_v46 = vmul.f32 %v1493_v37, %v759_v36 }
 0x155   : > { %v1495_v40 = vpop.eup %1494  ;;  %v1290_v43 = vsel %vm763_vm2, 1.0, %v1756_v41  ;;  %v577_v35 = vadd.f32 %v576_v1, %v443_v27 }
 0x156   : > { %v779_v44 = vmul.f32 %v775_v38, %v1995_v26  ;;  %v1316_v45 = vpack.c.bf16 %v1290_v43, %v1289_v42  ;;  %v760_v47 = vmax.f32 %v1495_v40, 0.0  ;;  %969 = vst [vmem:[#allocation2 + $0x10] sm:$0xff] %v2022_v39 }
 0x157   : > { %v1497_v25 = vpop.eup %1496 }
 0x158   : > { %1317 = vst [vmem:[%s1934_s14] sm:$0xff] %v1316_v45   ;;  %v776_v48 = vsub.f32 1.0, %v760_v47  ;;  %v2027_v49 = vadd.f32 %v779_v44, %v771_v46  ;;  %vm764_vm3 = vcmp.gt.f32.partialorder %v760_v47, 0.0  ;;  %v772_v26 = vmul.f32 %v1497_v25, %v760_v47 }
 0x159   : > { %v1499_v50 = vpop.eup %1498  ;;  %v1291_v59 = vsel %vm764_vm3, 1.0, %v1756_v41 }
 0x15a   : > { %v761_v51 = vmax.f32 %v1499_v50, 0.0  ;;  %v786_v52 = vpack.c.bf16 %v2027_v49, %v2022_v39  ;;  %970 = vst [vmem:[#allocation2] sm:$0xff] %v2027_v49  ;;  %v780_v53 = vmul.f32 %v776_v48, %v2000_v28 }
 0x15b   : > { %v1501_v54 = vpop.eup %1500 }
 0x15c   : > { %vm765_vm4 = vcmp.gt.f32.partialorder %v761_v51, 0.0  ;;  %v777_v56 = vsub.f32 1.0, %v761_v51  ;;  %917 = vmatmul.mubr.bf16.vlgmr.msra.gmra.mxu1 %v786_v52  ;;  %v2033_v57 = vadd.f32 %v780_v53, %v772_v26  ;;  %v773_v62 = vmul.f32 %v1501_v54, %v761_v51 }
 0x15d   : > { %v1292_v60 = vsel %vm765_vm4, 1.0, %v1756_v41  ;;  %926 = vmatprep.mubr.bf16.mxu1 %v1755_v6  ;;  %v586_v6 = vpop.f32.mrf.mxu1 }
 0x15e   : > { %v1319_v61 = vpack.c.bf16 %v1292_v60, %v1291_v59  ;;  %v781_v63 = vmul.f32 %v777_v56, %v2002_v29  ;;  %971 = vst [vmem:[#allocation2 + $0x18] sm:$0xff] %v2033_v57  ;;  %v587_v43 = vadd.f32 %v586_v6, %v443_v27 }
 0x15f   : > { %v588_v5 = vpop.f32.mrf.mxu1 }
 0x160   : > { %1321 = vst [vmem:[%s1934_s14 + $0x8] sm:$0xff] %v1319_v61   ;;  %v2039_v0 = vadd.f32 %v781_v63, %v773_v62  ;;  %v589_v21 = vadd.f32 %v588_v5, %v447_v8 }
 0x161   : > { %v590_v29 = vpop.f32.mrf.mxu1 }
 0x162   : > { %v787_v28 = vpack.c.bf16 %v2039_v0, %v2033_v57  ;;  %972 = vst [vmem:[#allocation2 + $0x8] sm:$0xff] %v2039_v0  ;;  %v591_v46 = vadd.f32 %v590_v29, %v443_v27 }
 0x163   : > { %v592_v9 = vpop.f32.mrf.mxu1 }
 0x164   : > { %927 = vmatmul.mubr.bf16.gmra.mxu1 %v787_v28  ;;  %v593_v31 = vadd.f32 %v592_v9, %v447_v8 }
 0x21c   : > { %v918_v10 = vpop.f32.mrf.mxu1 }
 0x21d   : > { %v919_v37 = vadd.f32 %v918_v10, %v577_v35 }
 0x21e   : > { %v920_v12 = vpop.f32.mrf.mxu1 }
 0x21f   : > { %v921_v13 = vadd.f32 %v920_v12, %v579_v11 }
 0x220   : > { %v922_v14 = vpop.f32.mrf.mxu1 }
 0x221   : > { %v1285_v16 = vmul.f32 -1.442695, %v921_v13  ;;  %v923_v41 = vadd.f32 %v922_v14, %v581_v55 }
 0x222   : > { %v924_v17 = vpop.f32.mrf.mxu1 }
 0x223   : > { %1502 = vpow2.f32 %v1285_v16  ;;  %v925_v18 = vadd.f32 %v924_v17, %v583_v15 }
 0x224   : > { %v928_v20 = vpop.f32.mrf.mxu1 }
 0x225   : > { %v1286_v22 = vmul.f32 -1.442695, %v925_v18  ;;  %v929_v58 = vadd.f32 %v928_v20, %v587_v43 }
 0x226   : > { %v930_v23 = vpop.f32.mrf.mxu1 }
 0x227   : > { %1504 = vpow2.f32 %v1286_v22  ;;  %v931_v24 = vadd.f32 %v930_v23, %v589_v21 }
 0x228   : > { %v932_v30 = vpop.f32.mrf.mxu1 }
 0x229   : > { %v1287_v32 = vmul.f32 -1.442695, %v931_v24  ;;  %v933_v25 = vadd.f32 %v932_v30, %v591_v46 }
 0x22a   : > { %v934_v33 = vpop.f32.mrf.mxu1 }
 0x22b   : > { %1506 = vpow2.f32 %v1287_v32  ;;  %v935_v34 = vadd.f32 %v934_v33, %v593_v31 }
 0x22d   : > { %v1288_v36 = vmul.f32 -1.442695, %v935_v34 }
 0x22f   : > { %1508 = vpow2.f32 %v1288_v36 }
 0x230   : > { %v1503_v38 = vpop.eup %1502  ;;  %1510 = vtanh.f32 %v919_v37 }
 0x231   : > { %v953_v40 = vadd.f32 1.0, %v1503_v38 }
 0x233   : > { %1512 = vrcp.f32 %v953_v40 }
 0x234   : > { %v1505_v42 = vpop.eup %1504  ;;  %1514 = vtanh.f32 %v923_v41 }
 0x235   : > { %v954_v44 = vadd.f32 1.0, %v1505_v42 }
 0x237   : > { %1516 = vrcp.f32 %v954_v44 }
 0x238   : > { %v1507_v45 = vpop.eup %1506  ;;  %1518 = vtanh.f32 %v929_v58 }
 0x239   : > { %v955_v47 = vadd.f32 1.0, %v1507_v45 }
 0x23b   : > { %1520 = vrcp.f32 %v955_v47 }
 0x23c   : > { %v1509_v48 = vpop.eup %1508  ;;  %1522 = vtanh.f32 %v933_v25 }
 0x23d   : > { %v956_v50 = vadd.f32 1.0, %v1509_v48  ;;  %v1511_v51 = vpop.eup %1510 }
 0x23f   : > { %1524 = vrcp.f32 %v956_v50 }
 0x240   : > { %v1513_v52 = vpop.eup %1512 }
 0x241   : > { %v965_v26 = vmul.f32 %v1513_v52, %v1511_v51  ;;  %v1515_v53 = vpop.eup %1514 }
 0x243   : > { %973 = vst [vmem:[%s1932_s26] sm:$0xff] %v965_v26 }
 0x244   : > { %v1517_v54 = vpop.eup %1516 }
 0x245   : > { %v966_v56 = vmul.f32 %v1517_v54, %v1515_v53  ;;  %v1519_v59 = vpop.eup %1518 }
 0x247   : > { %974 = vst [vmem:[%s1932_s26 + $0x8] sm:$0xff] %v966_v56 }
 0x248   : > { %v1521_v60 = vpop.eup %1520 }
 0x249   : > { %v967_v61 = vmul.f32 %v1521_v60, %v1519_v59  ;;  %v1523_v62 = vpop.eup %1522 }
 0x24b   : > { %975 = vst [vmem:[%s1932_s26 + $0x10] sm:$0xff] %v967_v61  ;;  %1008 = sbr.rel (%p1297_p9) target bundleno = 594 (0x252), region = 64 }
 0x24c   : > { %v1525_v63 = vpop.eup %1524 }
 0x24d   : > { %v968_v28 = vmul.f32 %v1525_v63, %v1523_v62 }
 0x24f   : > { %976 = vst [vmem:[%s1932_s26 + $0x18] sm:$0xff] %v968_v28 }
 0x250   : > { %1009 = vst [vmem:[#allocation12] sm:$0xff] %v2022_v39  ;;  %1010 = vst [vmem:[#allocation12 + $0x8] sm:$0xff] %v2027_v49 }
 0x251   : > { %1011 = vst [vmem:[#allocation12 + $0x10] sm:$0xff] %v2033_v57  ;;  %1012 = vst [vmem:[#allocation12 + $0x18] sm:$0xff] %v2039_v0 }
 0x252 PF: > { %s1018_s25 = sand.u32 1, %s1840_s11   ;;  %s1314_s16 = sshll.u32 %s1738_s30, 8 }
 0x253   : > { %s2062_s21 = scalar_lea.hbm %s2164_s7, %s1314_s16  ;;  %s1052_s12 = sshll.u32 %s1934_s14, 4  ;;  %s2065_s12 = int_to_ptr.vmem [resolvable:$true] %s1052_s12 }
 0x254   : > { %s2067_s19 = scalar_lea.sflag [#allocation11], %s1018_s25  ;;  %s1604_s22 = scalar_lea.vmem %s2065_s12, 256 }
 0x255   : > { %p1605_p11 = scmp.ne.s32.totalorder %s2065_s12, %s1604_s22  ;;  %s1757_s0 = smov [#allocation10]  }
 0x256   : > { %s1608_s24 = sshll.u32 %s1757_s0, 4  ;;  %s1609_s24 = int_to_ptr.vmem [resolvable:$false] %s1608_s24 }
 0x257   : > { %p1606_p12 = pnand %p1605_p11, %p1854_p4  ;;  %s1610_s1 = scalar_lea.vmem %s1609_s24, 512 }
 0x258   : > { %p1611_p3 = scmp.lt.s32.totalorder %s2065_s12, %s1609_s24  ;;  %p1612_p6 = scmp.lt.s32.totalorder %s1610_s1, %s1604_s22 }
 0x259   : > { %p1607_p1 = pneg %p1606_p12 }
 0x25a   : > { %p1613_p5 = por %p1612_p6, %p1611_p3 }
 0x25c   : > { %p1614_p0 = pnand %p1613_p5, %p1607_p1 }
 0x25e   : > { %1617 = shalt.err (!%p1614_p0)
}
 0x25f   : > { %s1618_s14 = scalar_lea.hbm %s2062_s21, 256  ;;  %s1622_s20 = scalar_lea.hbm %s2164_s7, 1536 }
 0x260   : > { %p1619_p2 = scmp.ne.s32.totalorder %s2062_s21, %s1618_s14  ;;  %p1623_p13 = scmp.lt.s32.totalorder %s2062_s21, %s2164_s7 }
 0x261   : > { %p1624_p9 = scmp.lt.s32.totalorder %s1622_s20, %s1618_s14 }
 0x262   : > { %p1620_p7 = pnand %p1619_p2, %p1854_p4 }
 0x263   : > { %p1625_p11 = por %p1624_p9, %p1623_p13 }
 0x264   : > { %p1621_p10 = pneg %p1620_p7 }
 0x266   : > { %p1626_p12 = pnand %p1625_p11, %p1621_p10 }
 0x268   : > { %1629 = shalt.err (!%p1626_p12)
}
 0x269   : > { %s1758_s1 = smov 64   ;;  %s1759_s22 = smov 4  }
 0x26a   : > { %1335 = dma.vmem_to_hbm [thread:$0]  (%p1854_p4), %s2065_s12, 256, %s2062_s21, %s2067_s19, %s1758_s1, %s1758_s1, %s1759_s22  }
 0x26b   : > { %s1313_s24 = sshll.u32 %s1738_s30, 9  ;;  %s1034_s20 = sshll.u32 %s1932_s26, 4  ;;  %s2097_s20 = int_to_ptr.vmem [resolvable:$true] %s1034_s20 }
 0x26c   : > { %s2094_s14 = scalar_lea.hbm %s2163_s6, %s1313_s24  ;;  %s1014_s23 = scalar_lea.sflag [#allocation5], %s1921_s13 }
 0x26d   : > { %s1630_s0 = scalar_lea.vmem %s2097_s20, 512  ;;  %s1760_s2 = smov [#allocation9]  }
 0x26e   : > { %p1631_p1 = scmp.ne.s32.totalorder %s2097_s20, %s1630_s0  ;;  %s1634_s21 = sshll.u32 %s1760_s2, 4  ;;  %s1635_s21 = int_to_ptr.vmem [resolvable:$false] %s1634_s21 }
 0x26f   : > { %s1636_s30 = scalar_lea.vmem %s1635_s21, 1024  ;;  %p1637_p5 = scmp.lt.s32.totalorder %s2097_s20, %s1635_s21 }
 0x270   : > { %p1632_p3 = pnand %p1631_p1, %p1854_p4  ;;  %p1638_p0 = scmp.lt.s32.totalorder %s1636_s30, %s1630_s0 }
 0x272   : > { %p1633_p6 = pneg %p1632_p3  ;;  %p1639_p2 = por %p1638_p0, %p1637_p5 }
 0x274   : > { %p1640_p7 = pnand %p1639_p2, %p1633_p6 }
 0x276   : > { %1643 = shalt.err (!%p1640_p7)
}
 0x277   : > { %s1644_s26 = scalar_lea.hbm %s2094_s14, 512  ;;  %s1648_s2 = scalar_lea.hbm %s2163_s6, 3072 }
 0x278   : > { %p1645_p10 = scmp.ne.s32.totalorder %s2094_s14, %s1644_s26  ;;  %p1649_p11 = scmp.lt.s32.totalorder %s2094_s14, %s2163_s6 }
 0x279   : > { %p1650_p12 = scmp.lt.s32.totalorder %s1648_s2, %s1644_s26 }
 0x27a   : > { %p1646_p13 = pnand %p1645_p10, %p1854_p4 }
 0x27b   : > { %p1651_p1 = por %p1650_p12, %p1649_p11 }
 0x27c   : > { %p1647_p9 = pneg %p1646_p13 }
 0x27e   : > { %p1652_p3 = pnand %p1651_p1, %p1647_p9 }
 0x280   : > { %1655 = shalt.err (!%p1652_p3)
}
 0x281   : > { %s1761_s24 = smov 128   ;;  %s1762_s25 = smov 8  }
 0x282   : > { %1334 = dma.vmem_to_hbm [thread:$0]  (%p1854_p4), %s2097_s20, 512, %s2094_s14, %s1014_s23, %s1761_s24, %s1761_s24, %s1762_s25  }
 0x283   : > { %s1763_s16 = smov [#allocation12]   ;;  %p2185_p5 = scmp.eq.s32.totalorder %s1840_s11, 5 }
 0x284   : > { %s1068_s0 = sshll.u32 %s1763_s16, 4  ;;  %s1069_s0 = int_to_ptr.vmem [resolvable:$true] %s1068_s0 }
 0x285   : > { %s1656_s21 = scalar_lea.vmem %s1069_s0, 512  ;;  %p1663_p7 = scmp.lt.s32.totalorder %s1069_s0, %s1069_s0 }
 0x286   : > { %p1657_p6 = scmp.ne.s32.totalorder %s1069_s0, %s1656_s21  ;;  %p1664_p10 = scmp.lt.s32.totalorder %s1656_s21, %s1656_s21 }
 0x288   : > { %p1658_p0 = pnand %p1657_p6, %p2185_p5  ;;  %p1665_p13 = por %p1664_p10, %p1663_p7 }
 0x28a   : > { %p1659_p2 = pneg %p1658_p0 }
 0x28c   : > { %p1666_p9 = pnand %p1665_p13, %p1659_p2 }
 0x28e   : > { %1669 = shalt.err (!%p1666_p9)
}
 0x28f   : > { %p2186_p11 = pmov %p2185_p5  ;;  %p2187_p4 = pmov %p2185_p5 }
 0x291   : > { %1337 = dma.vmem_to_hbm [thread:$0]  (%p2186_p11), %s1069_s0, 512, %s2165_s8, [#allocation11], %s1761_s24, %s1761_s24, %s1762_s25  }
 0x292   : > { %1713 = dma.done.wait (%p2187_p4), [#allocation11], 512   ;;  %p2188_p12 = pmov %p2187_p4 }
 0x294   : > { %1715 = vsyncadd (%p2188_p12), [#allocation11], 4294966784 }
 0x295 PF: > { %p1367_p1 = scmp.ge.s32.totalorder %s1746_s10, 2  ;;  %s1087_s15 = sand.u32 1, %s1726_s27  }
 0x296   : > { %s1088_s13 = scalar_lea.sflag [#allocation5], %s1087_s15 }
 0x297   : > { %p1353_p3 = pnand %p1367_p1, %p1863_p8 }
 0x299   : > { %p1354_p6 = pneg %p1353_p3 }
 0x29b   : > { %1717 = dma.done.wait (%p1354_p6), %s1088_s13, 512  }
 0x29c   : > { %1719 = vsyncadd (%p1354_p6), %s1088_s13, 4294966784  ;;  %s2189_s14 = sadd.s32 4294967294, %s1746_s10  }
 0x29d   : > { %s1096_s20 = sand.u32 1, %s2189_s14  }
 0x29e   : > { %s1097_s23 = scalar_lea.sflag [#allocation11], %s1096_s20 }
 0x29f   : > { %1721 = dma.done.wait (%p1354_p6), %s1097_s23, 256  }
 0x2a0   : > { %1723 = vsyncadd (%p1354_p6), %s1097_s23, 4294967040  ;;  %s27_s10 = sadd.s32 1, %s1746_s10   ;;  %s2190_s11 = sld [smem:[#allocation18_spill]] }
 0x2a1   : > { %p24_p5 = scmp.ge.s32.totalorder %s27_s10, 8   ;;  %s2191_s27 = smov %s1730_s28 }
 0x2a2   : > { %s2192_s28 = smov %s1734_s29  ;;  %s2193_s29 = smov %s1869_s18 }
 0x2a3   : > { %s2194_s30 = smov %s1742_s9  ;;  %26 = sbr.rel (!%p24_p5) target bundleno = 12 (0xc), region = 127 }
 0x2a6   : > { %s2195_s9 = smov %s2190_s11 }
 0x2a8   :  { %1102 = vsyncpa [#allocation4], 1 }
 0x2a9   :  { %1104 = vsyncpa [#allocation4 + $0x1], 1 }
 0x2aa   :  { %1105 = vsyncpa [#allocation7], 1 }
 0x2ab   :  { %1106 = vsyncpa [#allocation5], 1 }
 0x2ac   :  { %1108 = vsyncpa [#allocation5 + $0x1], 1 }
 0x2ad   :  { %1109 = vsyncpa [#allocation11], 1 }
 0x2ae   :  { %1111 = vsyncpa [#allocation11 + $0x1], 1 }

</bundles_post_ra>
